<compile_context>
chip_gen: v7x
topology: tpu7x:2x2x1
jax: 0.10.0
libtpu: 0.0.40
codegen_flags: <defaults>
</compile_context>

<pallas_src>
import functools

import jax
import jax.numpy as jnp
from jax.experimental import pallas as pl
from jax.experimental.pallas import tpu as pltpu


_SUBLANE_PACK = {4: 8, 2: 16, 1: 32}   # dtype bytes -> sublane packing


def _round_up(a: int, m: int) -> int:
    return (a + m - 1) // m * m


def _vmem_budget_bytes(frac: float = 0.85, fallback_bytes: int = 64 * 1024 * 1024) -> int:
    """Per-generation VMEM budget with headroom for Mosaic internal scratch."""
    try:
        cap = pltpu.get_tpu_info().vmem_capacity_bytes
    except Exception:
        cap = fallback_bytes
    return int(cap * frac)


def _residual_linear_kernel(*refs, mxu_dtype=None):
    # Resident-W path:  (x_ref[tm,Hp], w_ref[Hp,Hp],  b_ref[1,Hp], o_ref[tm,Hp])
    # Streamed-W path:  (x_ref[tm,Hp], w_ref[Hp,tn],  b_ref[1,tn],
    #                    xr_ref[tm,tn] (matching x column strip), o_ref[tm,tn])
    if len(refs) == 5:
        x_ref, w_ref, b_ref, xr_ref, o_ref = refs
    else:
        x_ref, w_ref, b_ref, o_ref = refs
        xr_ref = x_ref                       # tn == Hp: the full tile is the strip

    x = x_ref[...]
    w = w_ref[...]
    if mxu_dtype is not None and x.dtype != mxu_dtype:
        x = x.astype(mxu_dtype)              # bf16 MXU path (accumulation stays f32)
        w = w.astype(mxu_dtype)

    y = jnp.dot(x, w, preferred_element_type=jnp.float32)     # MXU, f32 accumulation
    y = y + b_ref[...].astype(jnp.float32)                     # bias in f32

    x_res = xr_ref[...]
    if o_ref.dtype == jnp.bfloat16:
        # bf16 epilogue: avoid a full-tile f32 upcast of the residual operand.
        o_ref[...] = y.astype(jnp.bfloat16) + x_res.astype(jnp.bfloat16)
    else:
        o_ref[...] = (y + x_res.astype(jnp.float32)).astype(o_ref.dtype)


def residual_block(x, w, b, *, tm_max: int = 512, tn_max: int = 512,
                   mxu_dtype=None, force_stream_w: bool = False):
    """out = fn(x) + x  with fn = Linear(H, H).   x: [B, S, H], w: [H, H], b: [H]."""
    B, S, H = x.shape
    M = B * S
    dtype = x.dtype
    dtype_bytes = jnp.dtype(dtype).itemsize
    sublane = _SUBLANE_PACK.get(dtype_bytes, 8)

    Hp = _round_up(H, 128)                       # lane-dense last dim
    budget = _vmem_budget_bytes()

    # ---- W strategy: resident (fetched once, single-buffered) vs. streamed N strips.
    resident_w = (not force_stream_w) and (Hp * Hp * dtype_bytes <= budget // 3)
    if resident_w:
        tn = Hp
    else:
        # Prefer 512/256-wide strips (256-wide MXU on v6e/v7x); tn always divides Hp.
        tn = next((c for c in (512, 256, 128)
                   if c <= max(tn_max, 128) and Hp % c == 0), 128)
        while 2 * Hp * tn * dtype_bytes > budget // 3 and tn > 128:
            tn //= 2

    # ---- Token tile: multiple of the dtype's sublane packing, shrunk to fit VMEM.
    tm = max(sublane, min(tm_max, _round_up(M, sublane)))
    tm = _round_up(tm, sublane)
    w_vmem = (1 if resident_w else 2) * Hp * tn * dtype_bytes

    def _xout_bytes(tm_):
        per_elems = 2 * tm_ * Hp + 2 * tm_ * tn            # x tile + out tile (dbl-buffered)
        if not resident_w:
            per_elems += 2 * tm_ * tn                        # residual x strip (dbl-buffered)
        return per_elems * dtype_bytes

    while tm > sublane and w_vmem + _xout_bytes(tm) > budget:
        tm = max(sublane, _round_up(tm // 2, sublane))

    grid = (pl.cdiv(M, tm), Hp // tn)            # ragged last M tile is masked by Pallas

    # ---- Lane padding only when H is not 128-aligned (pad params once at init in a
    #      real model; x's K-dim pad is required for the matmul).
    x2d = x.reshape(M, H)
    if Hp != H:
        x2d = jnp.pad(x2d, ((0, 0), (0, Hp - H)))
        w = jnp.pad(w, ((0, Hp - H), (0, Hp - H)))
        b = jnp.pad(b, ((0, Hp - H),))
    b2d = b.reshape(1, Hp)

    x_spec = pl.BlockSpec((tm, Hp), lambda i, n: (i, 0))      # resident across N strips
    out_spec = pl.BlockSpec((tm, tn), lambda i, n: (i, n))
    if resident_w:
        # Constant index map -> fetched once; single buffer halves resident-W VMEM.
        w_spec = pl.BlockSpec((Hp, Hp), lambda i, n: (0, 0), pipeline_mode=pl.Buffered(1))
        b_spec = pl.BlockSpec((1, Hp), lambda i, n: (0, 0), pipeline_mode=pl.Buffered(1))
        in_specs = [x_spec, w_spec, b_spec]
        operands = (x2d, w, b2d)
    else:
        w_spec = pl.BlockSpec((Hp, tn), lambda i, n: (0, n))  # streamed column strip
        b_spec = pl.BlockSpec((1, tn), lambda i, n: (0, n))
        xr_spec = pl.BlockSpec((tm, tn), lambda i, n: (i, n))  # residual column strip of x
        in_specs = [x_spec, w_spec, b_spec, xr_spec]
        operands = (x2d, w, b2d, x2d)

    out2d = pl.pallas_call(
        functools.partial(_residual_linear_kernel, mxu_dtype=mxu_dtype),
        out_shape=jax.ShapeDtypeStruct((M, Hp), dtype),
        grid_spec=pltpu.PrefetchScalarGridSpec(
            num_scalar_prefetch=0,
            grid=grid,
            in_specs=in_specs,
            out_specs=out_spec,
        ),
        compiler_params=pltpu.CompilerParams(
            dimension_semantics=("parallel", "arbitrary"),   # M megacore-shardable, N inner
            vmem_limit_bytes=budget,
        ),
        cost_estimate=pl.CostEstimate(
            flops=2 * M * H * H,
            transcendentals=0,
            bytes_accessed=(2 * M * H + H * H + H) * dtype_bytes,
        ),
    )(*operands)

    if Hp != H:
        out2d = out2d[:, :H]
    return out2d.reshape(B, S, H)


def residual_block_ref(x, w, b):
    # pure-JAX reference: fn(x) + x
    return jnp.einsum("bsh,hk->bsk", x, w) + b + x


if __name__ == "__main__":
    key = jax.random.PRNGKey(0)
    kx, kw, kb = jax.random.split(key, 3)

    # --- Test 1: small f32, resident-W path (lane pad, single-buffered W) ----------
    B, S, H = 2, 8, 32
    x = jax.random.normal(kx, (B, S, H), dtype=jnp.float32)
    w = jax.random.normal(kw, (H, H), dtype=jnp.float32) * (1.0 / jnp.sqrt(H))
    b = jax.random.normal(kb, (H,), dtype=jnp.float32) * 0.01
    out = residual_block(x, w, b)
    jax.block_until_ready(out)
    ref = residual_block_ref(x, w, b)
    assert out.shape == (B, S, H)
    assert jnp.allclose(out, ref, atol=1e-4, rtol=1e-4), "f32 resident-W path mismatch"

    # --- Test 2: streamed-W path, ragged M tile, multi-strip N ---------------------
    # M = 24 vs tm = 16 (ragged last tile), Hp = 256 with tn = 128 -> 2 W strips.
    B2, S2, H2 = 2, 12, 256
    x2 = jax.random.normal(kx, (B2, S2, H2), dtype=jnp.float32)
    w2 = jax.random.normal(kw, (H2, H2), dtype=jnp.float32) * (1.0 / jnp.sqrt(H2))
    b2 = jax.random.normal(kb, (H2,), dtype=jnp.float32) * 0.01
    out2 = residual_block(x2, w2, b2, tm_max=16, tn_max=128, force_stream_w=True)
    jax.block_until_ready(out2)
    ref2 = residual_block_ref(x2, w2, b2)
    assert out2.shape == (B2, S2, H2)
    assert jnp.allclose(out2, ref2, atol=1e-2, rtol=1e-2), "streamed-W path mismatch"

    # --- Test 3: bf16 inputs (bf16 MXU + bf16 epilogue), H % 128 == 0 (no padding) -
    B3, S3, H3 = 2, 8, 128
    x3 = jax.random.normal(kx, (B3, S3, H3), dtype=jnp.bfloat16)
    w3 = (jax.random.normal(kw, (H3, H3), dtype=jnp.float32) / jnp.sqrt(H3)).astype(jnp.bfloat16)
    b3 = (jax.random.normal(kb, (H3,), dtype=jnp.float32) * 0.01).astype(jnp.bfloat16)
    out3 = residual_block(x3, w3, b3)
    jax.block_until_ready(out3)
    ref3 = residual_block_ref(x3.astype(jnp.float32), w3.astype(jnp.float32),
                              b3.astype(jnp.float32))
    assert out3.shape == (B3, S3, H3)
    assert jnp.allclose(out3.astype(jnp.float32), ref3, atol=1e-1, rtol=1e-1), \
        "bf16 path mismatch"

    print("KERNEL_OK")
</pallas_src>

<mosaic_0001>
module attributes {stable_mosaic.version = 11 : i64} {
  func.func @_residual_linear_kernel(%arg0: i32, %arg1: i32, %arg2: memref<16x128xf32, #tpu.memory_space<vmem>>, %arg3: memref<128x128xf32, #tpu.memory_space<vmem>>, %arg4: memref<1x128xf32, #tpu.memory_space<vmem>>, %arg5: memref<16x128xf32, #tpu.memory_space<vmem>>) attributes {dimension_semantics = [#tpu.dimension_semantics<parallel>, #tpu.dimension_semantics<arbitrary>], iteration_bounds = array<i64: 1, 1>, scalar_prefetch = 0 : i64, scratch_operands = 0 : i64, tpu.core_type = #tpu.core_type<tc>, window_params = [{transform_indices = @transform_0, window_bounds = array<i64: 16, 128>}, {pipeline_mode = #tpu.pipeline_mode<synchronous>, transform_indices = @transform_1, window_bounds = array<i64: 128, 128>}, {pipeline_mode = #tpu.pipeline_mode<synchronous>, transform_indices = @transform_2, window_bounds = array<i64: 1, 128>}, {transform_indices = @transform_3, window_bounds = array<i64: 16, 128>}]} {
    %c0 = arith.constant 0 : index
    %c0_0 = arith.constant 0 : index
    %0 = vector.load %arg2[%c0, %c0_0] : memref<16x128xf32, #tpu.memory_space<vmem>>, vector<16x128xf32>
    %c0_1 = arith.constant 0 : index
    %c0_2 = arith.constant 0 : index
    %1 = vector.load %arg3[%c0_1, %c0_2] : memref<128x128xf32, #tpu.memory_space<vmem>>, vector<128x128xf32>
    %cst = arith.constant dense<0.000000e+00> : vector<16x128xf32>
    %2 = tpu.matmul %0, %1, %cst {dimension_numbers = #tpu.dot_dimension_numbers<[1], [0], [0], [1], [0, 0, 1, 1], [], []>} : vector<16x128xf32>, vector<128x128xf32>, vector<16x128xf32> -> vector<16x128xf32>
    %c0_3 = arith.constant 0 : index
    %c0_4 = arith.constant 0 : index
    %3 = vector.load %arg4[%c0_3, %c0_4] : memref<1x128xf32, #tpu.memory_space<vmem>>, vector<1x128xf32>
    %4 = vector.broadcast %3 : vector<1x128xf32> to vector<16x128xf32>
    %5 = arith.addf %2, %4 : vector<16x128xf32>
    %c0_5 = arith.constant 0 : index
    %c0_6 = arith.constant 0 : index
    %6 = vector.load %arg2[%c0_5, %c0_6] : memref<16x128xf32, #tpu.memory_space<vmem>>, vector<16x128xf32>
    %7 = arith.addf %5, %6 : vector<16x128xf32>
    %c0_7 = arith.constant 0 : index
    %c0_8 = arith.constant 0 : index
    %8 = vector.load %arg5[%c0_7, %c0_8] : memref<16x128xf32, #tpu.memory_space<vmem>>, vector<16x128xf32>
    tpu.vector_store %arg5[%c0_7, %c0_8], %7 {strides = array<i32>} : memref<16x128xf32, #tpu.memory_space<vmem>>, vector<16x128xf32>,
    return
  }
  func.func @transform_0(%arg0: i32, %arg1: i32) -> (i32, i32) {
    %c0_i32 = arith.constant 0 : i32
    %c0_i32_0 = arith.constant 0 : i32
    return %arg0, %c0_i32 : i32, i32
  }
  func.func @transform_1(%arg0: i32, %arg1: i32) -> (i32, i32) {
    %c0_i32 = arith.constant 0 : i32
    %c0_i32_0 = arith.constant 0 : i32
    %c0_i32_1 = arith.constant 0 : i32
    return %c0_i32, %c0_i32_0 : i32, i32
  }
  func.func @transform_2(%arg0: i32, %arg1: i32) -> (i32, i32) {
    %c0_i32 = arith.constant 0 : i32
    %c0_i32_0 = arith.constant 0 : i32
    %c0_i32_1 = arith.constant 0 : i32
    return %c0_i32, %c0_i32_0 : i32, i32
  }
  func.func @transform_3(%arg0: i32, %arg1: i32) -> (i32, i32) {
    %c0_i32 = arith.constant 0 : i32
    return %arg0, %arg1 : i32, i32
  }
}

</mosaic_0001>

<bundles_post_ra>
// kernel: tpu_custom_call.1
= control target key start
LH: loop header
LB: loop body
LE: loop exit
PB: predicated region body
PF: predicated region fallthrough
CT: control target
= control target key end

     0   :  { %8 = vsyncpa [#allocation3], 0  ;;  %s401_s0 = inlined_call_operand.hbm [shape: f32[16,128], index: 0, kind: input, shape index: {}]   ;;  %s402_s1 = inlined_call_operand.hbm [shape: f32[128,128], index: 1, kind: input, shape index: {}]   ;;  %s403_s2 = inlined_call_operand.vmem [shape: f32[1,128], index: 2, kind: input, shape index: {}]   ;;  %s404_s3 = inlined_call_operand.hbm [shape: f32[16,128], index: 3, kind: output, shape index: {}]  }
   0x1   :  { %9 = vsyncpa [#allocation6], 0 }
   0x2   :  { %10 = vsyncpa [#allocation4], 0  ;;  %s328_s12 = smov [#allocation2]   ;;  %s256_s16 = scalar_lea.hbm %s401_s0, 256 }
   0x3   :  { %s16_s13 = sshll.u32 %s328_s12, 4  ;;  %p257_p0 = scmp.ne.s32.totalorder %s401_s0, %s256_s16  ;;  %s17_s13 = int_to_ptr.vmem [resolvable:$true] %s16_s13 }
   0x4   :  { %p260_p1 = scmp.lt.u32.totalorder %s256_s16, %s401_s0 }
   0x6   :  { %p262_p2 = pnand %p260_p1, %p257_p0 }
   0x8   :  { %265 = shalt.err (!%p262_p2)
}
   0x9   :  { %s266_s21 = scalar_lea.vmem %s17_s13, 256  ;;  %p271_p4 = scmp.lt.s32.totalorder %s17_s13, %s17_s13 }
   0xa   :  { %p267_p3 = scmp.ne.s32.totalorder %s17_s13, %s266_s21  ;;  %p272_p5 = scmp.lt.s32.totalorder %s266_s21, %s266_s21 }
   0xc   :  { %p273_p6 = por %p272_p5, %p271_p4 }
   0xe   :  { %p274_p7 = pnand %p273_p6, %p267_p3 }
  0x10   :  { %277 = shalt.err (!%p274_p7)
}
  0x11   :  { %s329_s22 = smov 128   ;;  %s330_s23 = smov 8  }
  0x12   :  { %22 = dma.hbm_to_vmem [thread:$0]  %s401_s0, 256, %s17_s13, [#allocation3], %s329_s22, %s329_s22, %s330_s23  }
  0x13   :  { %s331_s26 = smov [#allocation5]   ;;  %s278_s30 = scalar_lea.hbm %s402_s1, 2048 }
  0x14   :  { %s28_s27 = sshll.u32 %s331_s26, 4  ;;  %p279_p8 = scmp.ne.s32.totalorder %s402_s1, %s278_s30  ;;  %s29_s27 = int_to_ptr.vmem [resolvable:$true] %s28_s27 }
  0x15   :  { %p282_p9 = scmp.lt.u32.totalorder %s278_s30, %s402_s1 }
  0x17   :  { %p284_p10 = pnand %p282_p9, %p279_p8 }
  0x19   :  { %287 = shalt.err (!%p284_p10)
}
  0x1a   :  { %s288_s8 = scalar_lea.vmem %s29_s27, 2048  ;;  %p293_p12 = scmp.lt.s32.totalorder %s29_s27, %s29_s27 }
  0x1b   :  { %p289_p11 = scmp.ne.s32.totalorder %s29_s27, %s288_s8  ;;  %p294_p13 = scmp.lt.s32.totalorder %s288_s8, %s288_s8 }
  0x1d   :  { %p295_p0 = por %p294_p13, %p293_p12 }
  0x1f   :  { %p296_p1 = pnand %p295_p0, %p289_p11 }
  0x21   :  { %299 = shalt.err (!%p296_p1)
}
  0x22   :  { %34 = dma.hbm_to_vmem [thread:$0]  %s402_s1, 2048, %s29_s27, [#allocation6], %s329_s22, %s329_s22, %s330_s23  }
  0x23   :  { %322 = dma.done.wait [#allocation3], 256  }
  0x24   :  { %323 = vsyncadd [#allocation3], 4294967040 }
  0x25   :  { %324 = dma.done.wait [#allocation6], 2048  }
  0x26   :  { %325 = vsyncadd [#allocation6], 4294965248  ;;  %v45_v0 = vld [vmem:[#allocation5] sm:$0xff]  ;;  %v46_v1 = vld [vmem:[#allocation5 + $0x8] sm:$0xff]  ;;  %s332_s11 = smov [#allocation7]  }
  0x27   :  { %v47_v2 = vld [vmem:[#allocation5 + $0x10] sm:$0xff]  ;;  %v219_v3 = vpack.c.bf16 %v46_v1, %v45_v0  ;;  %v48_v4 = vld [vmem:[#allocation5 + $0x18] sm:$0xff]  ;;  %v49_v6 = vld [vmem:[#allocation5 + $0x20] sm:$0xff]  ;;  %s152_s12 = sshll.u32 %s332_s11, 4  ;;  %s153_s12 = int_to_ptr.vmem [resolvable:$true] %s152_s12 }
  0x28   :  { %v223_v5 = vpack.c.bf16 %v48_v4, %v47_v2  ;;  %v50_v7 = vld [vmem:[#allocation5 + $0x28] sm:$0xff]  ;;  %v43_v9 = vld [vmem:[#allocation2] sm:$0xff]  ;;  %v52_v11 = vld [vmem:[#allocation5 + $0x38] sm:$0xff]  ;;  %s300_s13 = scalar_lea.vmem %s153_s12, 256  ;;  %p305_p3 = scmp.lt.s32.totalorder %s153_s12, %s153_s12 }
  0x29   :  { %220 = vmatprep.subr.bf16.mxu0 %v219_v3  ;;  %v227_v8 = vpack.c.bf16 %v50_v7, %v49_v6  ;;  %v51_v10 = vld [vmem:[#allocation5 + $0x30] sm:$0xff]  ;;  %216 = vmatprep.mubr.f32.mxu0 %v43_v9  ;;  %v53_v13 = vld [vmem:[#allocation5 + $0x40] sm:$0xff]  ;;  %v54_v14 = vld [vmem:[#allocation5 + $0x48] sm:$0xff]  ;;  %p301_p2 = scmp.ne.s32.totalorder %s153_s12, %s300_s13  ;;  %p306_p4 = scmp.lt.s32.totalorder %s300_s13, %s300_s13 }
  0x2a   :  { %222 = vmatpush3.bf16.msra.mxu0 %v219_v3  ;;  %v231_v12 = vpack.c.bf16 %v52_v11, %v51_v10  ;;  %v235_v15 = vpack.c.bf16 %v54_v14, %v53_v13  ;;  %v55_v16 = vld [vmem:[#allocation5 + $0x50] sm:$0xff]  ;;  %v56_v17 = vld [vmem:[#allocation5 + $0x58] sm:$0xff]  ;;  %v57_v19 = vld [vmem:[#allocation5 + $0x60] sm:$0xff] }
  0x2b   :  { %224 = vmatprep.subr.bf16.mxu0 %v223_v5  ;;  %v239_v18 = vpack.c.bf16 %v56_v17, %v55_v16  ;;  %v58_v20 = vld [vmem:[#allocation5 + $0x68] sm:$0xff]  ;;  %v59_v22 = vld [vmem:[#allocation5 + $0x70] sm:$0xff]  ;;  %v60_v23 = vld [vmem:[#allocation5 + $0x78] sm:$0xff]  ;;  %p307_p5 = por %p306_p4, %p305_p3 }
  0x2c   :  { %v243_v21 = vpack.c.bf16 %v58_v20, %v57_v19  ;;  %v247_v24 = vpack.c.bf16 %v60_v23, %v59_v22  ;;  %v44_v25 = vld [vmem:[#allocation2 + $0x8] sm:$0xff]  ;;  %v165_v26 = vld [vmem:[%s403_s2] ss:$0 sm:$0xff] }
  0x2d   :  { %p308_p6 = pnand %p307_p5, %p301_p2 }
  0x2e   :  { %226 = vmatpush3.bf16.msra.mxu0 %v223_v5 }
  0x2f   :  { %228 = vmatprep.subr.bf16.mxu0 %v227_v8 }
  0x32   :  { %230 = vmatpush3.bf16.msra.mxu0 %v227_v8 }
  0x33   :  { %232 = vmatprep.subr.bf16.mxu0 %v231_v12 }
  0x36   :  { %234 = vmatpush3.bf16.msra.mxu0 %v231_v12 }
  0x37   :  { %236 = vmatprep.subr.bf16.mxu0 %v235_v15 }
  0x3a   :  { %238 = vmatpush3.bf16.msra.mxu0 %v235_v15 }
  0x3b   :  { %240 = vmatprep.subr.bf16.mxu0 %v239_v18 }
  0x3e   :  { %242 = vmatpush3.bf16.msra.mxu0 %v239_v18 }
  0x3f   :  { %244 = vmatprep.subr.bf16.mxu0 %v243_v21 }
  0x42   :  { %246 = vmatpush3.bf16.msra.mxu0 %v243_v21 }
  0x43   :  { %248 = vmatprep.subr.bf16.mxu0 %v247_v24 }
  0x46   :  { %250 = vmatpush3.bf16.msra.mxu0 %v247_v24 }
  0x49   :  { %217 = vmatmul.mubr.f32.vlgmr.msra.gmra.mrb[0].mxu0 %v44_v25 }
 0x11c   :  { %v218_v27 = vpop.f32.mrb[0].mxu0 }
 0x11d   :  { %v140_v28 = vadd.f32 %v218_v27, %v165_v26  ;;  %v134_v29 = vpop.f32.mrb[1].mxu0 }
 0x11e   :  { %v135_v30 = vadd.f32 %v165_v26, %v134_v29 }
 0x11f   :  { %v144_v31 = vadd.f32 %v140_v28, %v44_v25 }
 0x120   :  { %v143_v32 = vadd.f32 %v135_v30, %v43_v9 }
 0x121   :  { %146 = vst [vmem:[#allocation7 + $0x8] sm:$0xff] %v144_v31 }
 0x122   :  { %145 = vst [vmem:[#allocation7] sm:$0xff] %v143_v32 }
 0x123   :  { %311 = shalt.err (!%p308_p6)
}
 0x124   :  { %s312_s15 = scalar_lea.hbm %s404_s3, 256 }
 0x125   :  { %p313_p7 = scmp.ne.s32.totalorder %s404_s3, %s312_s15  ;;  %p316_p8 = scmp.lt.u32.totalorder %s312_s15, %s404_s3 }
 0x127   :  { %p318_p9 = pnand %p316_p8, %p313_p7 }
 0x129   :  { %321 = shalt.err (!%p318_p9)
}
 0x12a   :  { %158 = dma.vmem_to_hbm [thread:$0]  %s153_s12, 256, %s404_s3, [#allocation4], %s329_s22, %s329_s22, %s330_s23  }
 0x12b   :  { %326 = dma.done.wait [#allocation4], 256  }
 0x12c   :  { %327 = vsyncadd [#allocation4], 4294967040 }
 0x12d   :  { %162 = vsyncpa [#allocation3], 1 }
 0x12e   :  { %163 = vsyncpa [#allocation6], 1 }
 0x12f   :  { %164 = vsyncpa [#allocation4], 1 }

</bundles_post_ra>
